<compile_context>
chip_gen: v7x
topology: tpu7x:2x2x1
jax: 0.10.0
libtpu: 0.0.40
codegen_flags: <defaults>
</compile_context>

<pallas_src>
import math

import jax
import jax.numpy as jnp
from jax.experimental import pallas as pl
from jax.experimental.pallas import tpu as pltpu

_SQRT_2_OVER_PI = math.sqrt(2.0 / math.pi)


def _gelu_kernel(x_ref, o_ref):
    # Upcast to f32 for the polynomial + tanh (PyTorch float opmath for halves).
    x = x_ref[...].astype(jnp.float32)
    t = x + 0.044715 * (x * x * x)
    t = jnp.tanh(_SQRT_2_OVER_PI * t)     # EUP slot -- hidden under the HBM stream
    o_ref[...] = (0.5 * x * t).astype(o_ref.dtype)


def _tpu_vmem_capacity_bytes():
    try:
        info = pltpu.get_tpu_info()
    except Exception:
        return None
    for name in ("vmem_capacity_bytes", "vmem_size_bytes", "vmem_bytes"):
        cap = getattr(info, name, None)
        if cap:
            return int(cap)
    return None


def _generation_budget():
    """Return (target_block_bytes, vmem_limit_bytes) tuned per TPU generation."""
    cap = _tpu_vmem_capacity_bytes()
    if cap is not None and cap <= (64 << 20):
        # v7x: 64 MiB VMEM per TensorCore.  6 MiB blocks * 4 live buffers
        # (in+out, double-buffered) = 24 MiB; 44 MiB scoped limit leaves headroom.
        return 6 << 20, 44 << 20
    if cap is not None:
        # v5e / v6e: 128 MiB physical VMEM.  8 MiB blocks -> 32 MiB live.
        return 8 << 20, 64 << 20
    # Unknown generation: conservative numbers that are safe everywhere.
    return 6 << 20, 40 << 20


def _choose_layout(shape):
    """Flatten to a lane-dense (rows, lane) slab; returns (rows, lane, pad_elems)."""
    total = math.prod(shape) if len(shape) else 1
    total = max(total, 1)
    for lane in (4096, 2048, 1024, 512, 256, 128):
        if total % lane == 0:
            return total // lane, lane, 0
    # Odd element counts: pad the flat length to the next multiple of 128 so
    # every output store is an unmasked full-lane vst.
    lane = 128
    padded = -(-total // lane) * lane
    return padded // lane, lane, padded - total


def _choose_row_tile(rows, lane, itemsize, target_block_bytes, min_steps=8):
    """Byte-budgeted row tile, with a minimum step count for pipeline overlap."""
    mult = max(8, 32 // itemsize)            # sublane packing: 8 f32 / 16 bf16 / 32 i8
    if rows <= mult:
        return rows                          # single block; row dim == full array dim
    row_bytes = lane * itemsize
    # Byte-budgeted tile, rounded down to the packing multiple.
    tr = max((target_block_bytes // row_bytes) // mult * mult, mult)
    steps = -(-rows // tr)
    if steps < min_steps:
        # Too few grid steps for DMA-in / compute / DMA-out overlap.  Shrink the
        # tile toward >= min_steps steps, but keep each block >= ~512 KiB so the
        # ~0.35 us per-step overhead stays small on every generation.
        per_step = -(-rows // min_steps)
        per_step = max(-(-per_step // mult) * mult, mult)
        floor_rows = max(((512 << 10) // row_bytes) // mult * mult, mult)
        tr = min(max(per_step, floor_rows), tr)
        tr = min(tr, rows)
    return tr


def gelu(x: jax.Array, *, target_block_bytes: int | None = None,
         vmem_limit_bytes: int | None = None) -> jax.Array:
    """Tanh-approx GELU matching the PyTorch module's forward."""
    orig_shape = x.shape
    itemsize = jnp.dtype(x.dtype).itemsize

    if target_block_bytes is None or vmem_limit_bytes is None:
        tbb, vlb = _generation_budget()
        target_block_bytes = target_block_bytes or tbb
        vmem_limit_bytes = vmem_limit_bytes or vlb

    rows, lane, pad = _choose_layout(orig_shape)
    flat = x.reshape(-1)
    if pad:
        flat = jnp.pad(flat, (0, pad))
    x2 = flat.reshape(rows, lane)

    tr = _choose_row_tile(rows, lane, itemsize, target_block_bytes)
    grid = (pl.cdiv(rows, tr),)

    out = pl.pallas_call(
        _gelu_kernel,
        out_shape=jax.ShapeDtypeStruct((rows, lane), x.dtype),
        grid_spec=pltpu.PrefetchScalarGridSpec(
            num_scalar_prefetch=0,
            grid=grid,
            in_specs=[pl.BlockSpec((tr, lane), lambda i: (i, 0))],
            out_specs=pl.BlockSpec((tr, lane), lambda i: (i, 0)),
        ),
        compiler_params=pltpu.CompilerParams(
            dimension_semantics=("parallel",),
            vmem_limit_bytes=vmem_limit_bytes,
        ),
    )(x2)

    out_flat = out.reshape(-1)
    if pad:
        out_flat = out_flat[: out_flat.shape[0] - pad]
    return out_flat.reshape(orig_shape)


def _gelu_ref(x):
    xf = x.astype(jnp.float32)
    t = xf + 0.044715 * jnp.power(xf, 3)
    t = jnp.tanh(jnp.float32(_SQRT_2_OVER_PI) * t)
    return (0.5 * xf * t).astype(x.dtype)


if __name__ == "__main__":
    key = jax.random.PRNGKey(0)

    # Small GPT-like activation tensor: (batch=2, seq=8, hidden=32), f32.
    x = jax.random.normal(key, (2, 8, 32), dtype=jnp.float32)
    y = gelu(x)
    jax.block_until_ready(y)
    assert y.shape == x.shape and y.dtype == x.dtype
    assert jnp.allclose(y, _gelu_ref(x), atol=1e-5, rtol=1e-5)

    # Odd element count (exercises the pad-to-128-lane path).
    x_odd = jax.random.normal(jax.random.PRNGKey(1), (3, 5, 7), dtype=jnp.float32)
    y_odd = gelu(x_odd)
    jax.block_until_ready(y_odd)
    assert y_odd.shape == x_odd.shape
    assert jnp.allclose(y_odd, _gelu_ref(x_odd), atol=1e-5, rtol=1e-5)

    # bf16 input (exercises f32 opmath + cast-at-store path).
    x_bf = jax.random.normal(jax.random.PRNGKey(2), (2, 8, 32), dtype=jnp.bfloat16)
    y_bf = gelu(x_bf)
    jax.block_until_ready(y_bf)
    assert y_bf.dtype == jnp.bfloat16
    assert jnp.allclose(y_bf.astype(jnp.float32),
                        _gelu_ref(x_bf).astype(jnp.float32), atol=2e-2, rtol=2e-2)

    print("KERNEL_OK")
</pallas_src>

<mosaic_0001>
module attributes {stable_mosaic.version = 11 : i64} {
  func.func @_gelu_kernel(%arg0: i32, %arg1: memref<1x512xf32, #tpu.memory_space<vmem>>, %arg2: memref<1x512xf32, #tpu.memory_space<vmem>>) attributes {dimension_semantics = [#tpu.dimension_semantics<parallel>], iteration_bounds = array<i64: 1>, scalar_prefetch = 0 : i64, scratch_operands = 0 : i64, tpu.core_type = #tpu.core_type<tc>, window_params = [{transform_indices = @transform_0, window_bounds = array<i64: 1, 512>}, {transform_indices = @transform_1, window_bounds = array<i64: 1, 512>}]} {
    %c0 = arith.constant 0 : index
    %c0_0 = arith.constant 0 : index
    %0 = vector.load %arg1[%c0, %c0_0] : memref<1x512xf32, #tpu.memory_space<vmem>>, vector<1x512xf32>
    %1 = arith.mulf %0, %0 : vector<1x512xf32>
    %2 = arith.mulf %1, %0 : vector<1x512xf32>
    %cst = arith.constant 4.471500e-02 : f32
    %3 = vector.broadcast %cst : f32 to vector<1x512xf32>
    %4 = arith.mulf %3, %2 : vector<1x512xf32>
    %5 = arith.addf %0, %4 : vector<1x512xf32>
    %cst_1 = arith.constant 0.797884583 : f32
    %6 = vector.broadcast %cst_1 : f32 to vector<1x512xf32>
    %7 = arith.mulf %6, %5 : vector<1x512xf32>
    %8 = math.tanh %7 : vector<1x512xf32>
    %cst_2 = arith.constant 5.000000e-01 : f32
    %9 = vector.broadcast %cst_2 : f32 to vector<1x512xf32>
    %10 = arith.mulf %9, %0 : vector<1x512xf32>
    %11 = arith.mulf %10, %8 : vector<1x512xf32>
    %c0_3 = arith.constant 0 : index
    %c0_4 = arith.constant 0 : index
    %12 = vector.load %arg2[%c0_3, %c0_4] : memref<1x512xf32, #tpu.memory_space<vmem>>, vector<1x512xf32>
    tpu.vector_store %arg2[%c0_3, %c0_4], %11 {strides = array<i32>} : memref<1x512xf32, #tpu.memory_space<vmem>>, vector<1x512xf32>,
    return
  }
  func.func @transform_0(%arg0: i32) -> (i32, i32) {
    %c0_i32 = arith.constant 0 : i32
    %c0_i32_0 = arith.constant 0 : i32
    return %arg0, %c0_i32 : i32, i32
  }
  func.func @transform_1(%arg0: i32) -> (i32, i32) {
    %c0_i32 = arith.constant 0 : i32
    %c0_i32_0 = arith.constant 0 : i32
    return %arg0, %c0_i32 : i32, i32
  }
}

</mosaic_0001>

<bundles_post_ra>
// kernel: tpu_custom_call.1
= control target key start
LH: loop header
LB: loop body
LE: loop exit
PB: predicated region body
PF: predicated region fallthrough
CT: control target
= control target key end

     0   :  { %6 = vsyncpa [#allocation3], 0  ;;  %s138_s0 = inlined_call_operand.hbm [shape: f32[1,512], index: 0, kind: input, shape index: {}]   ;;  %s139_s1 = inlined_call_operand.hbm [shape: f32[1,512], index: 1, kind: output, shape index: {}]  }
   0x1   :  { %7 = vsyncpa [#allocation4], 0  ;;  %s102_s6 = smov [#allocation2]   ;;  %s54_s10 = scalar_lea.hbm %s138_s0, 64 }
   0x2   :  { %s14_s7 = sshll.u32 %s102_s6, 4  ;;  %p55_p0 = scmp.ne.s32.totalorder %s138_s0, %s54_s10  ;;  %s15_s7 = int_to_ptr.vmem [resolvable:$true] %s14_s7 }
   0x3   :  { %p58_p1 = scmp.lt.u32.totalorder %s54_s10, %s138_s0 }
   0x5   :  { %p60_p2 = pnand %p58_p1, %p55_p0 }
   0x7   :  { %63 = shalt.err (!%p60_p2)
}
   0x8   :  { %s64_s15 = scalar_lea.vmem %s15_s7, 64  ;;  %p69_p4 = scmp.lt.s32.totalorder %s15_s7, %s15_s7 }
   0x9   :  { %p65_p3 = scmp.ne.s32.totalorder %s15_s7, %s64_s15  ;;  %p70_p5 = scmp.lt.s32.totalorder %s64_s15, %s64_s15 }
   0xb   :  { %p71_p6 = por %p70_p5, %p69_p4 }
   0xd   :  { %p72_p7 = pnand %p71_p6, %p65_p3 }
   0xf   :  { %75 = shalt.err (!%p72_p7)
}
  0x10   :  { %17 = dma.hbm_to_vmem [thread:$0]  %s138_s0, 64, %s15_s7, [#allocation3]  }
  0x11   :  { %98 = dma.done.wait [#allocation3], 64  }
  0x12   :  { %99 = vsyncadd [#allocation3], 4294967232  ;;  %v21_v0 = vld [vmem:[#allocation2] sm:$0xf]  ;;  %v30_v6 = vlaneseq  ;;  %s103_s18 = smov [#allocation5]  }
  0x13   :  { %v22_v1 = vmul.f32 %v21_v0, %v21_v0  ;;  %v28_v7 = vmul.f32 0.5, %v21_v0  ;;  %s41_s19 = sshll.u32 %s103_s18, 4  ;;  %s42_s19 = int_to_ptr.vmem [resolvable:$true] %s41_s19 }
  0x14   :  { %vm32_vm0 = vcmp.lt.s32.totalorder %v30_v6, 512  ;;  %s76_s20 = scalar_lea.vmem %s42_s19, 64  ;;  %p81_p9 = scmp.lt.s32.totalorder %s42_s19, %s42_s19 }
  0x15   :  { %v23_v2 = vmul.f32 %v22_v1, %v21_v0  ;;  %p77_p8 = scmp.ne.s32.totalorder %s42_s19, %s76_s20  ;;  %p82_p10 = scmp.lt.s32.totalorder %s76_s20, %s76_s20 }
  0x17   :  { %v24_v3 = vmul.f32 0.044715, %v23_v2  ;;  %p83_p11 = por %p82_p10, %p81_p9 }
  0x19   :  { %v25_v4 = vadd.f32 %v24_v3, %v21_v0  ;;  %p84_p12 = pnand %p83_p11, %p77_p8 }
  0x1b   :  { %v26_v5 = vmul.f32 0.7978846, %v25_v4 }
  0x1d   :  { %52 = vtanh.f32 %v26_v5 }
  0x27   :  { %v53_v8 = vpop.eup %52 }
  0x28   :  { %v29_v9 = vmul.f32 %v53_v8, %v28_v7 }
  0x2a   :  { %34 = vst.msk [vmem:[#allocation5] sm:$0xf] %vm32_vm0, %v29_v9 }
  0x2b   :  { %87 = shalt.err (!%p84_p12)
}
  0x2c   :  { %s88_s22 = scalar_lea.hbm %s139_s1, 64 }
  0x2d   :  { %p89_p13 = scmp.ne.s32.totalorder %s139_s1, %s88_s22  ;;  %p92_p0 = scmp.lt.u32.totalorder %s88_s22, %s139_s1 }
  0x2f   :  { %p94_p1 = pnand %p92_p0, %p89_p13 }
  0x31   :  { %97 = shalt.err (!%p94_p1)
}
  0x32   :  { %44 = dma.vmem_to_hbm [thread:$0]  %s42_s19, 64, %s139_s1, [#allocation4]  }
  0x33   :  { %100 = dma.done.wait [#allocation4], 64  }
  0x34   :  { %101 = vsyncadd [#allocation4], 4294967232 }
  0x35   :  { %48 = vsyncpa [#allocation3], 1 }
  0x36   :  { %49 = vsyncpa [#allocation4], 1 }

</bundles_post_ra>
